<compile_context>
chip_gen: v6e
topology: v6e:2x2x1
jax: 0.10.0
libtpu: 0.0.40
codegen_flags: <defaults>
</compile_context>

<pallas_src>
import functools

import jax
import jax.numpy as jnp
from jax.experimental import pallas as pl
from jax.experimental.pallas import tpu as pltpu


def ffn_kernel(x_ref, w1_ref, b1_ref, w2_ref, b2_ref, o_ref, acc_ref, *,
               compute_dtype):
    k = pl.program_id(1)

    @pl.when(k == 0)
    def _():
        acc_ref[...] = jnp.zeros_like(acc_ref)

    # In-kernel cast of the activation tile (VPU, hidden under the MXU).
    x = x_ref[...].astype(compute_dtype)
    # dense1 partial: (tm, d_in) @ (d_in, tk), f32 accumulation on the MXU.
    h = jnp.dot(x, w1_ref[...], preferred_element_type=jnp.float32)
    # bias + ReLU in f32 on the VPU; exact per hidden slice (elementwise in d_h).
    h = jnp.maximum(h + b1_ref[...], 0.0)
    # dense2 partial: accumulate (tm, tk) @ (tk, d_o) into the f32 scratch.
    acc_ref[...] += jnp.dot(h.astype(w2_ref.dtype), w2_ref[...],
                            preferred_element_type=jnp.float32)

    @pl.when(k == pl.num_programs(1) - 1)
    def _():
        o_ref[...] = (acc_ref[...] + b2_ref[...]).astype(o_ref.dtype)


def _round_up(n, m):
    return (n + m - 1) // m * m


def _cdiv(a, b):
    return -(-a // b)


def _pick_row_tile(m, tm_max):
    """Balanced row tile: bounds padding waste, multiple of 16 (bf16 sublanes)."""
    n_tiles = max(1, _cdiv(m, tm_max))
    return _round_up(_cdiv(m, n_tiles), 16)


def position_wise_ffn(x, w1, b1, w2, b2, *, tm=256, tk=512,
                      compute_dtype=jnp.bfloat16, out_dtype=None):
    """x: (batch, seq, d_in); w1: (d_in, d_h); b1: (d_h,); w2: (d_h, d_o); b2: (d_o,).

    Weights are stored transposed relative to PyTorch's nn.Linear (out, in)
    layout so the kernel computes x @ W directly on the MXU.
    """
    batch, seq, d_in = x.shape
    d_h = w1.shape[1]
    d_o = w2.shape[1]
    M = batch * seq
    out_dtype = x.dtype if out_dtype is None else out_dtype

    LANE = 128
    d_in_p = _round_up(d_in, LANE)
    d_o_p = _round_up(d_o, LANE)

    # Hidden-dim tiling: tk is a multiple of 128, hidden padded to a whole
    # number of tiles.  Zero-padded hidden units have zero weight + zero bias,
    # so ReLU(0)=0 and they contribute nothing to the accumulator.
    tk = max(LANE, _round_up(min(tk, _round_up(d_h, LANE)), LANE))
    d_h_p = _round_up(d_h, tk)
    num_k = d_h_p // tk

    # Row tiling: balanced tiles bound padding waste (e.g. M=260 -> tm=144,
    # not a 97%-wasted second 256-row tile).
    tm = _pick_row_tile(M, tm)
    M_p = _round_up(M, tm)
    num_i = M_p // tm

    # Zero-padding is exact: padded x cols hit zero w1 rows; padded output
    # columns / rows are sliced off below.  x stays f32 in HBM (cast in-kernel).
    x2d = jnp.pad(x.reshape(M, d_in), ((0, M_p - M), (0, d_in_p - d_in)))
    w1p = jnp.pad(w1, ((0, d_in_p - d_in), (0, d_h_p - d_h))).astype(compute_dtype)
    w2p = jnp.pad(w2, ((0, d_h_p - d_h), (0, d_o_p - d_o))).astype(compute_dtype)
    b1p = jnp.pad(b1, (0, d_h_p - d_h)).reshape(1, d_h_p).astype(jnp.float32)
    b2p = jnp.pad(b2, (0, d_o_p - d_o)).reshape(1, d_o_p).astype(jnp.float32)

    # Buffering: constant-index blocks need no double-buffering; k-varying
    # weight tiles keep 2 buffers so the next hidden slice prefetches.
    w_buf = pl.Buffered(1) if num_k == 1 else pl.Buffered(2)
    const_buf = pl.Buffered(1)

    c_item = jnp.dtype(compute_dtype).itemsize
    o_item = jnp.dtype(out_dtype).itemsize

    # VMEM budget: actual footprint + 50% headroom, clamped to [32, 64] MiB so
    # we never request a full v7x core's physical VMEM.
    wbuf_n = 1 if num_k == 1 else 2
    footprint = (2 * tm * d_in_p * 4                      # x tiles (f32)
                 + wbuf_n * d_in_p * tk * c_item          # W1 tiles
                 + wbuf_n * tk * 4                        # b1 tiles
                 + wbuf_n * tk * d_o_p * c_item           # W2 tiles
                 + d_o_p * 4                              # b2
                 + 2 * tm * d_o_p * o_item                # out tiles
                 + tm * d_o_p * 4                         # f32 accumulator
                 + 2 * tm * tk * 4)                       # h intermediate
    vmem_limit = max(32 << 20, min(int(footprint * 1.5) + (4 << 20), 64 << 20))

    cost = pl.CostEstimate(
        flops=2 * M_p * d_in_p * d_h_p + 2 * M_p * d_h_p * d_o_p,
        transcendentals=0,
        bytes_accessed=(M_p * d_in_p * 4
                        + num_i * d_in_p * d_h_p * c_item
                        + num_i * d_h_p * d_o_p * c_item
                        + 4 * (d_h_p + d_o_p)
                        + M_p * d_o_p * o_item),
    )

    kernel = functools.partial(ffn_kernel, compute_dtype=compute_dtype)

    out2d = pl.pallas_call(
        kernel,
        out_shape=jax.ShapeDtypeStruct((M_p, d_o_p), out_dtype),
        grid_spec=pltpu.PrefetchScalarGridSpec(
            num_scalar_prefetch=0,
            grid=(num_i, num_k),
            in_specs=[
                pl.BlockSpec((tm, d_in_p), lambda i, k: (i, 0)),     # x row tile
                pl.BlockSpec((d_in_p, tk), lambda i, k: (0, k),      # W1 slice
                             pipeline_mode=w_buf),
                pl.BlockSpec((1, tk), lambda i, k: (0, k),           # b1 slice
                             pipeline_mode=w_buf),
                pl.BlockSpec((tk, d_o_p), lambda i, k: (k, 0),       # W2 slice
                             pipeline_mode=w_buf),
                pl.BlockSpec((1, d_o_p), lambda i, k: (0, 0),        # b2
                             pipeline_mode=const_buf),
            ],
            out_specs=pl.BlockSpec((tm, d_o_p), lambda i, k: (i, 0)),
            scratch_shapes=[pltpu.VMEM((tm, d_o_p), jnp.float32)],
        ),
        compiler_params=pltpu.CompilerParams(
            dimension_semantics=("parallel", "arbitrary"),
            vmem_limit_bytes=vmem_limit,
        ),
        cost_estimate=cost,
    )(x2d, w1p, b1p, w2p, b2p)

    return out2d[:M, :d_o].reshape(batch, seq, d_o)


def _reference(x, w1, b1, w2, b2):
    return jnp.maximum(x @ w1 + b1, 0.0) @ w2 + b2


def _make_params(key, d_in, d_hidden, d_out):
    kw1, kb1, kw2, kb2 = jax.random.split(key, 4)
    bound1 = 1.0 / (d_in ** 0.5)
    bound2 = 1.0 / (d_hidden ** 0.5)
    w1 = jax.random.uniform(kw1, (d_in, d_hidden), jnp.float32, -bound1, bound1)
    b1 = jax.random.uniform(kb1, (d_hidden,), jnp.float32, -bound1, bound1)
    w2 = jax.random.uniform(kw2, (d_hidden, d_out), jnp.float32, -bound2, bound2)
    b2 = jax.random.uniform(kb2, (d_out,), jnp.float32, -bound2, bound2)
    return w1, b1, w2, b2


if __name__ == "__main__":
    key = jax.random.PRNGKey(0)
    k_small, k_big = jax.random.split(key, 2)

    # --- Test 1: small shapes from the module (ffn 32 -> 64 -> 32). -----------
    batch, seq = 2, 8
    d_in, d_hidden, d_out = 32, 64, 32
    kx, kp = jax.random.split(k_small, 2)
    x = jax.random.normal(kx, (batch, seq, d_in), dtype=jnp.float32)
    w1, b1, w2, b2 = _make_params(kp, d_in, d_hidden, d_out)
    ref = _reference(x, w1, b1, w2, b2)

    out = jax.block_until_ready(position_wise_ffn(x, w1, b1, w2, b2))
    assert out.shape == (batch, seq, d_out)
    # bf16 MXU operands (f32 accumulation) vs f32 reference -> loose tolerance.
    assert jnp.allclose(out, ref, atol=5e-2, rtol=5e-2), "bf16 mismatch vs reference"

    out_f32 = jax.block_until_ready(
        position_wise_ffn(x, w1, b1, w2, b2, compute_dtype=jnp.float32))
    assert jnp.allclose(out_f32, ref, atol=1e-5, rtol=1e-5), "f32 mismatch vs reference"

    # --- Test 2: odd M + multi-step hidden reduction (exercises the k axis). --
    batch2, seq2 = 3, 27                       # M = 81 -> tm = 96 (padded rows)
    d_in2, d_h2, d_o2 = 48, 320, 24            # d_h padded to 384 -> 3 k-steps
    kx2, kp2 = jax.random.split(k_big, 2)
    x2 = jax.random.normal(kx2, (batch2, seq2, d_in2), dtype=jnp.float32)
    w1b, b1b, w2b, b2b = _make_params(kp2, d_in2, d_h2, d_o2)
    ref2 = _reference(x2, w1b, b1b, w2b, b2b)

    out2 = jax.block_until_ready(
        position_wise_ffn(x2, w1b, b1b, w2b, b2b, tk=128,
                          compute_dtype=jnp.float32))
    assert out2.shape == (batch2, seq2, d_o2)
    assert jnp.allclose(out2, ref2, atol=1e-5, rtol=1e-5), "k-tiled mismatch vs reference"

    print("KERNEL_OK")
</pallas_src>

<mosaic_0001>
module attributes {stable_mosaic.version = 11 : i64} {
  func.func @ffn_kernel(%arg0: i32, %arg1: i32, %arg2: memref<16x128xf32, #tpu.memory_space<vmem>>, %arg3: memref<128x128xbf16, #tpu.memory_space<vmem>>, %arg4: memref<1x128xf32, #tpu.memory_space<vmem>>, %arg5: memref<128x128xbf16, #tpu.memory_space<vmem>>, %arg6: memref<1x128xf32, #tpu.memory_space<vmem>>, %arg7: memref<16x128xf32, #tpu.memory_space<vmem>>, %arg8: memref<16x128xf32, #tpu.memory_space<vmem>>) attributes {dimension_semantics = [#tpu.dimension_semantics<parallel>, #tpu.dimension_semantics<arbitrary>], iteration_bounds = array<i64: 1, 1>, scalar_prefetch = 0 : i64, scratch_operands = 1 : i64, tpu.core_type = #tpu.core_type<tc>, window_params = [{transform_indices = @transform_0, window_bounds = array<i64: 16, 128>}, {pipeline_mode = #tpu.pipeline_mode<synchronous>, transform_indices = @transform_1, window_bounds = array<i64: 128, 128>}, {pipeline_mode = #tpu.pipeline_mode<synchronous>, transform_indices = @transform_2, window_bounds = array<i64: 1, 128>}, {pipeline_mode = #tpu.pipeline_mode<synchronous>, transform_indices = @transform_3, window_bounds = array<i64: 128, 128>}, {pipeline_mode = #tpu.pipeline_mode<synchronous>, transform_indices = @transform_4, window_bounds = array<i64: 1, 128>}, {transform_indices = @transform_5, window_bounds = array<i64: 16, 128>}]} {
    %c0_i32 = arith.constant 0 : i32
    %0 = arith.cmpi eq, %arg1, %c0_i32 : i32
    %1 = arith.extui %0 : i1 to i32
    %c0_i32_0 = arith.constant 0 : i32
    %2 = arith.cmpi ne, %1, %c0_i32_0 : i32
    scf.if %2 {
      %cst_16 = arith.constant 0.000000e+00 : f32
      %21 = vector.broadcast %cst_16 : f32 to vector<16x128xf32>
      %c0_17 = arith.constant 0 : index
      %c0_18 = arith.constant 0 : index
      %22 = vector.load %arg8[%c0_17, %c0_18] : memref<16x128xf32, #tpu.memory_space<vmem>>, vector<16x128xf32>
      tpu.vector_store %arg8[%c0_17, %c0_18], %21 {strides = array<i32>} : memref<16x128xf32, #tpu.memory_space<vmem>>, vector<16x128xf32>,
    } else {
    }
    %c0 = arith.constant 0 : index
    %c0_1 = arith.constant 0 : index
    %3 = vector.load %arg2[%c0, %c0_1] : memref<16x128xf32, #tpu.memory_space<vmem>>, vector<16x128xf32>
    %4 = arith.truncf %3 : vector<16x128xf32> to vector<16x128xbf16>
    %c0_2 = arith.constant 0 : index
    %c0_3 = arith.constant 0 : index
    %5 = vector.load %arg3[%c0_2, %c0_3] : memref<128x128xbf16, #tpu.memory_space<vmem>>, vector<128x128xbf16>
    %cst = arith.constant dense<0.000000e+00> : vector<16x128xf32>
    %6 = tpu.matmul %4, %5, %cst {dimension_numbers = #tpu.dot_dimension_numbers<[1], [0], [0], [1], [0, 0, 1, 1], [], []>} : vector<16x128xbf16>, vector<128x128xbf16>, vector<16x128xf32> -> vector<16x128xf32>
    %c0_4 = arith.constant 0 : index
    %c0_5 = arith.constant 0 : index
    %7 = vector.load %arg4[%c0_4, %c0_5] : memref<1x128xf32, #tpu.memory_space<vmem>>, vector<1x128xf32>
    %8 = vector.broadcast %7 : vector<1x128xf32> to vector<16x128xf32>
    %9 = arith.addf %6, %8 : vector<16x128xf32>
    %cst_6 = arith.constant 0.000000e+00 : f32
    %10 = vector.broadcast %cst_6 : f32 to vector<16x128xf32>
    %11 = arith.maximumf %9, %10 : vector<16x128xf32>
    %c0_7 = arith.constant 0 : index
    %c0_8 = arith.constant 0 : index
    %12 = vector.load %arg8[%c0_7, %c0_8] : memref<16x128xf32, #tpu.memory_space<vmem>>, vector<16x128xf32>
    %13 = arith.truncf %11 : vector<16x128xf32> to vector<16x128xbf16>
    %c0_9 = arith.constant 0 : index
    %c0_10 = arith.constant 0 : index
    %14 = vector.load %arg5[%c0_9, %c0_10] : memref<128x128xbf16, #tpu.memory_space<vmem>>, vector<128x128xbf16>
    %cst_11 = arith.constant dense<0.000000e+00> : vector<16x128xf32>
    %15 = tpu.matmul %13, %14, %cst_11 {dimension_numbers = #tpu.dot_dimension_numbers<[1], [0], [0], [1], [0, 0, 1, 1], [], []>} : vector<16x128xbf16>, vector<128x128xbf16>, vector<16x128xf32> -> vector<16x128xf32>
    %16 = arith.addf %12, %15 : vector<16x128xf32>
    %c0_12 = arith.constant 0 : index
    %c0_13 = arith.constant 0 : index
    %17 = vector.load %arg8[%c0_12, %c0_13] : memref<16x128xf32, #tpu.memory_space<vmem>>, vector<16x128xf32>
    tpu.vector_store %arg8[%c0_12, %c0_13], %16 {strides = array<i32>} : memref<16x128xf32, #tpu.memory_space<vmem>>, vector<16x128xf32>,
    %c0_i32_14 = arith.constant 0 : i32
    %18 = arith.cmpi eq, %arg1, %c0_i32_14 : i32
    %19 = arith.extui %18 : i1 to i32
    %c0_i32_15 = arith.constant 0 : i32
    %20 = arith.cmpi ne, %19, %c0_i32_15 : i32
    scf.if %20 {
      %c0_16 = arith.constant 0 : index
      %c0_17 = arith.constant 0 : index
      %21 = vector.load %arg8[%c0_16, %c0_17] : memref<16x128xf32, #tpu.memory_space<vmem>>, vector<16x128xf32>
      %c0_18 = arith.constant 0 : index
      %c0_19 = arith.constant 0 : index
      %22 = vector.load %arg6[%c0_18, %c0_19] : memref<1x128xf32, #tpu.memory_space<vmem>>, vector<1x128xf32>
      %23 = vector.broadcast %22 : vector<1x128xf32> to vector<16x128xf32>
      %24 = arith.addf %21, %23 : vector<16x128xf32>
      %c0_20 = arith.constant 0 : index
      %c0_21 = arith.constant 0 : index
      %25 = vector.load %arg7[%c0_20, %c0_21] : memref<16x128xf32, #tpu.memory_space<vmem>>, vector<16x128xf32>
      tpu.vector_store %arg7[%c0_20, %c0_21], %24 {strides = array<i32>} : memref<16x128xf32, #tpu.memory_space<vmem>>, vector<16x128xf32>,
    } else {
    }
    return
  }
  func.func @transform_0(%arg0: i32, %arg1: i32) -> (i32, i32) {
    %c0_i32 = arith.constant 0 : i32
    %c0_i32_0 = arith.constant 0 : i32
    return %arg0, %c0_i32 : i32, i32
  }
  func.func @transform_1(%arg0: i32, %arg1: i32) -> (i32, i32) {
    %c0_i32 = arith.constant 0 : i32
    %c0_i32_0 = arith.constant 0 : i32
    return %c0_i32, %arg1 : i32, i32
  }
  func.func @transform_2(%arg0: i32, %arg1: i32) -> (i32, i32) {
    %c0_i32 = arith.constant 0 : i32
    %c0_i32_0 = arith.constant 0 : i32
    return %c0_i32, %arg1 : i32, i32
  }
  func.func @transform_3(%arg0: i32, %arg1: i32) -> (i32, i32) {
    %c0_i32 = arith.constant 0 : i32
    %c0_i32_0 = arith.constant 0 : i32
    return %arg1, %c0_i32 : i32, i32
  }
  func.func @transform_4(%arg0: i32, %arg1: i32) -> (i32, i32) {
    %c0_i32 = arith.constant 0 : i32
    %c0_i32_0 = arith.constant 0 : i32
    %c0_i32_1 = arith.constant 0 : i32
    return %c0_i32, %c0_i32_0 : i32, i32
  }
  func.func @transform_5(%arg0: i32, %arg1: i32) -> (i32, i32) {
    %c0_i32 = arith.constant 0 : i32
    %c0_i32_0 = arith.constant 0 : i32
    return %arg0, %c0_i32 : i32, i32
  }
}

</mosaic_0001>

<bundles_post_ra>
// kernel: tpu_custom_call.1
= control target key start
LH: loop header
LB: loop body
LE: loop exit
PB: predicated region body
PF: predicated region fallthrough
CT: control target
= control target key end

     0   :  { %10 = vsyncpa [#allocation4], 0  ;;  %s584_s0 = inlined_call_operand.hbm [shape: f32[16,128], index: 0, kind: input, shape index: {}]   ;;  %s585_s1 = inlined_call_operand.hbm [shape: bf16[128,128], index: 1, kind: input, shape index: {}]   ;;  %s586_s2 = inlined_call_operand.vmem [shape: f32[1,128], index: 2, kind: input, shape index: {}]   ;;  %s587_s3 = inlined_call_operand.hbm [shape: bf16[128,128], index: 3, kind: input, shape index: {}]   ;;  %s588_s4 = inlined_call_operand.vmem [shape: f32[1,128], index: 4, kind: input, shape index: {}]   ;;  %s589_s5 = inlined_call_operand.hbm [shape: f32[16,128], index: 5, kind: output, shape index: {}]  }
   0x1   :  { %11 = vsyncpa [#allocation7], 0 }
   0x2   :  { %12 = vsyncpa [#allocation5], 0  ;;  %s520_s18 = smov [#allocation6]  }
   0x3   :  { %s30_s19 = sshll.u32 %s520_s18, 4  ;;  %s31_s19 = int_to_ptr.vmem [resolvable:$true] %s30_s19 }
   0x4   :  { %s442_s20 = scalar_lea.vmem %s31_s19, 1024  ;;  %p447_p1 = scmp.lt.s32.totalorder %s31_s19, %s31_s19 }
   0x5   :  { %p443_p0 = scmp.ne.s32.totalorder %s31_s19, %s442_s20  ;;  %p448_p2 = scmp.lt.s32.totalorder %s442_s20, %s442_s20 }
   0x7   :  { %p449_p3 = por %p448_p2, %p447_p1 }
   0x9   :  { %p450_p4 = pnand %p449_p3, %p443_p0 }
   0xb   :  { %453 = shalt.err (!%p450_p4)
}
   0xc   :  { %s521_s21 = smov 64   ;;  %s522_s22 = smov 4  }
   0xd   :  { %36 = dma.hbm_to_vmem [thread:$0]  %s585_s1, 1024, %s31_s19, [#allocation7], %s521_s21, %s521_s21, %s522_s22  }
   0xe   :  { %s523_s25 = smov [#allocation3]  }
   0xf   :  { %s18_s26 = sshll.u32 %s523_s25, 4  ;;  %s19_s26 = int_to_ptr.vmem [resolvable:$true] %s18_s26 }
  0x10   :  { %s462_s27 = scalar_lea.vmem %s19_s26, 256  ;;  %p467_p6 = scmp.lt.s32.totalorder %s19_s26, %s19_s26 }
  0x11   :  { %p463_p5 = scmp.ne.s32.totalorder %s19_s26, %s462_s27  ;;  %p468_p7 = scmp.lt.s32.totalorder %s462_s27, %s462_s27 }
  0x13   :  { %p469_p8 = por %p468_p7, %p467_p6 }
  0x15   :  { %p470_p9 = pnand %p469_p8, %p463_p5 }
  0x17   :  { %473 = shalt.err (!%p470_p9)
}
  0x18   :  { %s524_s28 = smov 128   ;;  %s525_s29 = smov 8  }
  0x19   :  { %24 = dma.hbm_to_vmem [thread:$0]  %s584_s0, 256, %s19_s26, [#allocation4], %s524_s28, %s524_s28, %s525_s29  }
  0x1a   :  { %s526_s1 = smov [#allocation8]  }
  0x1b   :  { %s44_s7 = sshll.u32 %s526_s1, 4  ;;  %s45_s7 = int_to_ptr.vmem [resolvable:$true] %s44_s7 }
  0x1c   :  { %s482_s8 = scalar_lea.vmem %s45_s7, 1024  ;;  %p487_p11 = scmp.lt.s32.totalorder %s45_s7, %s45_s7 }
  0x1d   :  { %p483_p10 = scmp.ne.s32.totalorder %s45_s7, %s482_s8  ;;  %p488_p12 = scmp.lt.s32.totalorder %s482_s8, %s482_s8 }
  0x1f   :  { %p489_p13 = por %p488_p12, %p487_p11 }
  0x21   :  { %p490_p0 = pnand %p489_p13, %p483_p10 }
  0x23   :  { %493 = shalt.err (!%p490_p0)
}
  0x24   :  { %50 = dma.hbm_to_vmem [thread:$0]  %s587_s3, 1024, %s45_s7, [#allocation7], %s521_s21, %s521_s21, %s522_s22  }
  0x25   :  { %514 = dma.done.wait [#allocation4], 256  }
  0x26   :  { %515 = vsyncadd [#allocation4], 4294967040 }
  0x27   :  { %516 = dma.done.wait [#allocation7], 2048  }
  0x28   :  { %517 = vsyncadd [#allocation7], 4294965248  ;;  %v527_v0 = vmov 0.0   ;;  %vm528_vm0 = vmmov 0   ;;  %v418_v1 = vld [vmem:[#allocation6 + $0x38] sm:$0xff]   ;;  %v419_v2 = vld [vmem:[#allocation6 + $0x30] sm:$0xff]  }
  0x29   :  { %368 = vmatprep.subr.bf16.mxu0 %v527_v0  ;;  %384 = vmatprep.mubr.msk.bf16.mxu0 %vm528_vm0, %v527_v0  ;;  %v420_v3 = vld [vmem:[#allocation6 + $0x28] sm:$0xff]   ;;  %v426_v4 = vld [vmem:[#allocation8 + $0x38] sm:$0xff]   ;;  %v421_v5 = vld [vmem:[#allocation6 + $0x20] sm:$0xff]   ;;  %s529_s13 = smov [#allocation9]  }
  0x2a   :  { %388 = vmatprep.subr.bf16.mxu1 %v527_v0  ;;  %404 = vmatprep.mubr.msk.bf16.mxu1 %vm528_vm0, %v527_v0  ;;  %v427_v6 = vld [vmem:[#allocation8 + $0x30] sm:$0xff]   ;;  %v422_v7 = vld [vmem:[#allocation6 + $0x18] sm:$0xff]   ;;  %v428_v8 = vld [vmem:[#allocation8 + $0x28] sm:$0xff]   ;;  %s319_s14 = sshll.u32 %s529_s13, 4  ;;  %s320_s14 = int_to_ptr.vmem [resolvable:$true] %s319_s14 }
  0x2b   :  { %369 = vmatpush3.bf16.msra.mxu0 %v418_v1  ;;  %389 = vmatpush3.bf16.msra.mxu1 %v426_v4  ;;  %v423_v9 = vld [vmem:[#allocation6 + $0x10] sm:$0xff]   ;;  %v429_v10 = vld [vmem:[#allocation8 + $0x20] sm:$0xff]   ;;  %v424_v11 = vld [vmem:[#allocation6 + $0x8] sm:$0xff]   ;;  %p499_p2 = scmp.lt.s32.totalorder %s320_s14, %s320_s14 }
  0x2c   :  { %370 = vmatprep.subr.bf16.mxu0 %v527_v0  ;;  %390 = vmatprep.subr.bf16.mxu1 %v527_v0  ;;  %v430_v12 = vld [vmem:[#allocation8 + $0x18] sm:$0xff]   ;;  %v425_v13 = vld [vmem:[#allocation6] sm:$0xff]   ;;  %v69_v14 = vld [vmem:[#allocation3] sm:$0xff] }
  0x2d   :  { %v70_v15 = vld [vmem:[#allocation3 + $0x8] sm:$0xff]  ;;  %v431_v17 = vld [vmem:[#allocation8 + $0x10] sm:$0xff]   ;;  %v432_v18 = vld [vmem:[#allocation8 + $0x8] sm:$0xff]  }
  0x2e   :  { %v71_v16 = vpack.c.bf16 %v70_v15, %v69_v14  ;;  %v433_v19 = vld [vmem:[#allocation8] sm:$0xff]   ;;  %v332_v20 = vld [vmem:[%s586_s2] ss:$0 sm:$0xff]  ;;  %s494_s2 = scalar_lea.vmem %s320_s14, 256 }
  0x2f   :  { %371 = vmatpush3.bf16.msra.mxu0 %v419_v2  ;;  %391 = vmatpush3.bf16.msra.mxu1 %v427_v6  ;;  %v349_v30 = vld [vmem:[%s588_s4] ss:$0 sm:$0xff]  ;;  %p495_p1 = scmp.ne.s32.totalorder %s320_s14, %s494_s2  ;;  %p500_p3 = scmp.lt.s32.totalorder %s494_s2, %s494_s2 }
  0x30   :  { %372 = vmatprep.subr.bf16.mxu0 %v527_v0  ;;  %392 = vmatprep.subr.bf16.mxu1 %v527_v0 }
  0x31   :  { %p501_p4 = por %p500_p3, %p499_p2 }
  0x33   :  { %373 = vmatpush3.bf16.msra.mxu0 %v420_v3  ;;  %393 = vmatpush3.bf16.msra.mxu1 %v428_v8  ;;  %p502_p5 = pnand %p501_p4, %p495_p1 }
  0x34   :  { %374 = vmatprep.subr.bf16.mxu0 %v527_v0  ;;  %394 = vmatprep.subr.bf16.mxu1 %v527_v0 }
  0x37   :  { %375 = vmatpush3.bf16.msra.mxu0 %v421_v5  ;;  %395 = vmatpush3.bf16.msra.mxu1 %v429_v10 }
  0x38   :  { %376 = vmatprep.subr.bf16.mxu0 %v527_v0  ;;  %396 = vmatprep.subr.bf16.mxu1 %v527_v0 }
  0x3b   :  { %377 = vmatpush3.bf16.msra.mxu0 %v422_v7  ;;  %397 = vmatpush3.bf16.msra.mxu1 %v430_v12 }
  0x3c   :  { %378 = vmatprep.subr.bf16.mxu0 %v527_v0  ;;  %398 = vmatprep.subr.bf16.mxu1 %v527_v0 }
  0x3f   :  { %379 = vmatpush3.bf16.msra.mxu0 %v423_v9  ;;  %399 = vmatpush3.bf16.msra.mxu1 %v431_v17 }
  0x40   :  { %380 = vmatprep.subr.bf16.mxu0 %v527_v0  ;;  %400 = vmatprep.subr.bf16.mxu1 %v527_v0 }
  0x43   :  { %381 = vmatpush3.bf16.msra.mxu0 %v424_v11  ;;  %401 = vmatpush3.bf16.msra.mxu1 %v432_v18 }
  0x44   :  { %382 = vmatprep.subr.bf16.mxu0 %v527_v0  ;;  %402 = vmatprep.subr.bf16.mxu1 %v527_v0 }
  0x47   :  { %383 = vmatpush3.bf16.msra.mxu0 %v425_v13  ;;  %403 = vmatpush3.bf16.msra.mxu1 %v433_v19 }
  0x4a   :  { %385 = vmatmul.mubr.bf16.vlgmr.msra.gmra.mxu0 %v71_v16 }
 0x10a   :  { %v177_v21 = vpop.f32.mrf.mxu0 }
 0x10b   :  { %v178_v23 = vadd.f32 %v332_v20, %v177_v21 }
 0x10c   :  { %v386_v22 = vpop.f32.mrf.mxu0 }
 0x10d   :  { %v184_v27 = vmax.f32 %v178_v23, 0.0 }
 0x10e   :  { %v180_v24 = vpop.f32.mrf.mxu0 }
 0x10f   :  { %v181_v25 = vadd.f32 %v332_v20, %v180_v24 }
 0x110   :  { %v387_v26 = vpop.f32.mrf.mxu0 }
 0x111   :  { %v185_v28 = vmax.f32 %v181_v25, 0.0 }
 0x113   :  { %v188_v29 = vpack.c.bf16 %v185_v28, %v184_v27 }
 0x115   :  { %405 = vmatmul.mubr.bf16.vlgmr.msra.gmra.mxu1 %v188_v29 }
 0x1d5   :  { %v287_v31 = vpop.f32.mrf.mxu1 }
 0x1d6   :  { %v310_v32 = vadd.f32 %v349_v30, %v287_v31 }
 0x1d7   :  { %v406_v33 = vpop.f32.mrf.mxu1 }
 0x1d8   :  { %312 = vst [vmem:[#allocation9] sm:$0xff] %v310_v32 }
 0x1d9   :  { %v290_v34 = vpop.f32.mrf.mxu1 }
 0x1da   :  { %v311_v35 = vadd.f32 %v349_v30, %v290_v34 }
 0x1db   :  { %v407_v36 = vpop.f32.mrf.mxu1 }
 0x1dc   :  { %313 = vst [vmem:[#allocation9 + $0x8] sm:$0xff] %v311_v35 }
 0x1dd   :  { %505 = shalt.err (!%p502_p5)
}
 0x1de   :  { %325 = dma.vmem_to_hbm [thread:$0]  %s320_s14, 256, %s589_s5, [#allocation5], %s524_s28, %s524_s28, %s525_s29  }
 0x1df   :  { %518 = dma.done.wait [#allocation5], 256  }
 0x1e0   :  { %519 = vsyncadd [#allocation5], 4294967040 }
 0x1e1   :  { %329 = vsyncpa [#allocation4], 1 }
 0x1e2   :  { %330 = vsyncpa [#allocation7], 1 }
 0x1e3   :  { %331 = vsyncpa [#allocation5], 1 }

</bundles_post_ra>
